<compile_context>
chip_gen: v6e
topology: v6e:2x2x1
jax: 0.10.0
libtpu: 0.0.40
codegen_flags: <defaults>
</compile_context>

<pallas_src>
import functools

import jax
import jax.numpy as jnp
from jax.experimental import pallas as pl
from jax.experimental.pallas import tpu as pltpu

_LANES = 128


def _round_up(x: int, m: int) -> int:
    return (x + m - 1) // m * m


def _mlp_head_kernel(x_ref, w1_ref, b1_ref, w2_ref, b2_ref, o_ref):
    # Linear(in_dim -> hid_dim): bf16 x bf16 -> f32 accumulation on the MXU.
    h = jnp.dot(x_ref[...], w1_ref[...], preferred_element_type=jnp.float32)
    # bias (f32) + ReLU
    h = jnp.maximum(h + b1_ref[...], 0.0)
    # Dropout: module is evaluated in inference mode -> identity.
    # TODO(synk): training-mode dropout (pltpu.prng_random_bits mask) not emitted.
    # Linear(hid_dim -> out_dim_padded)
    out = jnp.dot(h.astype(w2_ref.dtype), w2_ref[...],
                  preferred_element_type=jnp.float32)
    o_ref[...] = (out + b2_ref[...]).astype(o_ref.dtype)


def value_prediction_head(x, w1, b1, w2, b2, *, tb=None,
                          compute_dtype=jnp.bfloat16):
    """x: (B, in_dim); w1: (in_dim, hid); b1: (hid,); w2: (hid, out); b2: (out,)."""
    B, in_dim = x.shape
    hid_dim = w1.shape[1]
    out_dim = w2.shape[1]
    out_dtype = x.dtype

    # Lane-dense output width (multiple of 128 lanes).
    out_pad = _round_up(out_dim, _LANES)

    # Pick a big batch tile: amortize the ~0.35us/step pipeline cost and feed
    # >=128/256 MXU rows; keep >=2 roughly-equal grid steps for v7x megacore
    # when the batch is big enough.
    b_min = _round_up(B, 8)
    if tb is None:
        if b_min >= 1024:
            tb = 512
        elif b_min >= 512:
            tb = 256
        else:
            tb = b_min          # tiny problem: single grid step
    b_pad = _round_up(B, tb)

    # Cast + pad in the wrapper (zero rows/cols -> sliced off after the call).
    xc = x.astype(compute_dtype)
    if b_pad != B:
        xc = jnp.pad(xc, ((0, b_pad - B), (0, 0)))
    w1c = w1.astype(compute_dtype)
    w2c = jnp.pad(w2, ((0, 0), (0, out_pad - out_dim))).astype(compute_dtype)
    b1_2d = b1.astype(jnp.float32).reshape(1, hid_dim)
    b2_2d = jnp.pad(b2.astype(jnp.float32),
                    (0, out_pad - out_dim)).reshape(1, out_pad)

    grid = (b_pad // tb,)

    flops = 2 * b_pad * in_dim * hid_dim + 2 * b_pad * hid_dim * out_pad
    bytes_accessed = (xc.size * xc.dtype.itemsize
                      + w1c.size * w1c.dtype.itemsize
                      + w2c.size * w2c.dtype.itemsize
                      + (b1_2d.size + b2_2d.size) * 4
                      + b_pad * out_pad * jnp.dtype(out_dtype).itemsize)

    resident = pl.Buffered(1)   # constant-index blocks: no double buffer needed

    out_padded = pl.pallas_call(
        _mlp_head_kernel,
        out_shape=jax.ShapeDtypeStruct((b_pad, out_pad), out_dtype),
        grid_spec=pltpu.PrefetchScalarGridSpec(
            num_scalar_prefetch=0,
            grid=grid,
            in_specs=[
                pl.BlockSpec((tb, in_dim), lambda i: (i, 0)),            # x tile
                pl.BlockSpec((in_dim, hid_dim), lambda i: (0, 0),
                             pipeline_mode=resident),                    # W1
                pl.BlockSpec((1, hid_dim), lambda i: (0, 0),
                             pipeline_mode=resident),                    # b1
                pl.BlockSpec((hid_dim, out_pad), lambda i: (0, 0),
                             pipeline_mode=resident),                    # W2
                pl.BlockSpec((1, out_pad), lambda i: (0, 0),
                             pipeline_mode=resident),                    # b2
            ],
            out_specs=pl.BlockSpec((tb, out_pad), lambda i: (i, 0)),
        ),
        compiler_params=pltpu.CompilerParams(
            dimension_semantics=("parallel",),
            vmem_limit_bytes=64 * 1024 * 1024,
        ),
        cost_estimate=pl.CostEstimate(
            flops=flops, transcendentals=0, bytes_accessed=bytes_accessed),
    )(xc, w1c, b1_2d, w2c, b2_2d)

    # Strip batch padding and the lane-padding of the output dimension.
    return out_padded[:B, :out_dim]


def _reference(x, w1, b1, w2, b2, compute_dtype=jnp.bfloat16):
    """Same math / same compute precision as the kernel, in plain XLA."""
    xc = x.astype(compute_dtype)
    w1c = w1.astype(compute_dtype)
    w2c = w2.astype(compute_dtype)
    h = jnp.dot(xc, w1c, preferred_element_type=jnp.float32) + b1.astype(jnp.float32)
    h = jnp.maximum(h, 0.0).astype(compute_dtype)
    out = jnp.dot(h, w2c, preferred_element_type=jnp.float32) + b2.astype(jnp.float32)
    return out.astype(x.dtype)


if __name__ == "__main__":
    # Small shapes consistent with the module: pooled_output is (batch, in_dim).
    batch, in_dim, hid_dim, out_dim = 8, 32, 64, 8

    key = jax.random.PRNGKey(0)
    kx, kw1, kb1, kw2, kb2 = jax.random.split(key, 5)

    x = jax.random.normal(kx, (batch, in_dim), dtype=jnp.float32)
    # Parameters stored transposed relative to PyTorch: (in_features, out_features).
    w1 = jax.random.normal(kw1, (in_dim, hid_dim), dtype=jnp.float32) * (1.0 / jnp.sqrt(in_dim))
    b1 = jax.random.normal(kb1, (hid_dim,), dtype=jnp.float32) * 0.01
    w2 = jax.random.normal(kw2, (hid_dim, out_dim), dtype=jnp.float32) * (1.0 / jnp.sqrt(hid_dim))
    b2 = jax.random.normal(kb2, (out_dim,), dtype=jnp.float32) * 0.01

    run = jax.jit(functools.partial(value_prediction_head))
    out = jax.block_until_ready(run(x, w1, b1, w2, b2))

    ref = _reference(x, w1, b1, w2, b2)
    assert out.shape == (batch, out_dim)
    assert out.dtype == x.dtype
    assert jnp.allclose(out, ref, atol=2e-3, rtol=2e-3), "mismatch vs reference"

    print("KERNEL_OK")
</pallas_src>

<mosaic_0001>
module attributes {stable_mosaic.version = 11 : i64} {
  func.func @_mlp_head_kernel(%arg0: i32, %arg1: memref<8x32xbf16, #tpu.memory_space<vmem>>, %arg2: memref<32x64xbf16, #tpu.memory_space<vmem>>, %arg3: memref<1x64xf32, #tpu.memory_space<vmem>>, %arg4: memref<64x128xbf16, #tpu.memory_space<vmem>>, %arg5: memref<1x128xf32, #tpu.memory_space<vmem>>, %arg6: memref<8x128xf32, #tpu.memory_space<vmem>>) attributes {dimension_semantics = [#tpu.dimension_semantics<parallel>], iteration_bounds = array<i64: 1>, scalar_prefetch = 0 : i64, scratch_operands = 0 : i64, tpu.core_type = #tpu.core_type<tc>, window_params = [{transform_indices = @transform_0, window_bounds = array<i64: 8, 32>}, {pipeline_mode = #tpu.pipeline_mode<synchronous>, transform_indices = @transform_1, window_bounds = array<i64: 32, 64>}, {pipeline_mode = #tpu.pipeline_mode<synchronous>, transform_indices = @transform_2, window_bounds = array<i64: 1, 64>}, {pipeline_mode = #tpu.pipeline_mode<synchronous>, transform_indices = @transform_3, window_bounds = array<i64: 64, 128>}, {pipeline_mode = #tpu.pipeline_mode<synchronous>, transform_indices = @transform_4, window_bounds = array<i64: 1, 128>}, {transform_indices = @transform_5, window_bounds = array<i64: 8, 128>}]} {
    %c0 = arith.constant 0 : index
    %c0_0 = arith.constant 0 : index
    %0 = vector.load %arg1[%c0, %c0_0] : memref<8x32xbf16, #tpu.memory_space<vmem>>, vector<8x32xbf16>
    %c0_1 = arith.constant 0 : index
    %c0_2 = arith.constant 0 : index
    %1 = vector.load %arg2[%c0_1, %c0_2] : memref<32x64xbf16, #tpu.memory_space<vmem>>, vector<32x64xbf16>
    %cst = arith.constant dense<0.000000e+00> : vector<8x64xf32>
    %2 = tpu.matmul %0, %1, %cst {dimension_numbers = #tpu.dot_dimension_numbers<[1], [0], [0], [1], [0, 0, 1, 1], [], []>} : vector<8x32xbf16>, vector<32x64xbf16>, vector<8x64xf32> -> vector<8x64xf32>
    %c0_3 = arith.constant 0 : index
    %c0_4 = arith.constant 0 : index
    %3 = vector.load %arg3[%c0_3, %c0_4] : memref<1x64xf32, #tpu.memory_space<vmem>>, vector<1x64xf32>
    %4 = vector.broadcast %3 : vector<1x64xf32> to vector<8x64xf32>
    %5 = arith.addf %2, %4 : vector<8x64xf32>
    %cst_5 = arith.constant 0.000000e+00 : f32
    %6 = vector.broadcast %cst_5 : f32 to vector<8x64xf32>
    %7 = arith.maximumf %5, %6 : vector<8x64xf32>
    %8 = arith.truncf %7 : vector<8x64xf32> to vector<8x64xbf16>
    %c0_6 = arith.constant 0 : index
    %c0_7 = arith.constant 0 : index
    %9 = vector.load %arg4[%c0_6, %c0_7] : memref<64x128xbf16, #tpu.memory_space<vmem>>, vector<64x128xbf16>
    %cst_8 = arith.constant dense<0.000000e+00> : vector<8x128xf32>
    %10 = tpu.matmul %8, %9, %cst_8 {dimension_numbers = #tpu.dot_dimension_numbers<[1], [0], [0], [1], [0, 0, 1, 1], [], []>} : vector<8x64xbf16>, vector<64x128xbf16>, vector<8x128xf32> -> vector<8x128xf32>
    %c0_9 = arith.constant 0 : index
    %c0_10 = arith.constant 0 : index
    %11 = vector.load %arg5[%c0_9, %c0_10] : memref<1x128xf32, #tpu.memory_space<vmem>>, vector<1x128xf32>
    %12 = vector.broadcast %11 : vector<1x128xf32> to vector<8x128xf32>
    %13 = arith.addf %10, %12 : vector<8x128xf32>
    %c0_11 = arith.constant 0 : index
    %c0_12 = arith.constant 0 : index
    %14 = vector.load %arg6[%c0_11, %c0_12] : memref<8x128xf32, #tpu.memory_space<vmem>>, vector<8x128xf32>
    tpu.vector_store %arg6[%c0_11, %c0_12], %13 {strides = array<i32>} : memref<8x128xf32, #tpu.memory_space<vmem>>, vector<8x128xf32>,
    return
  }
  func.func @transform_0(%arg0: i32) -> (i32, i32) {
    %c0_i32 = arith.constant 0 : i32
    %c0_i32_0 = arith.constant 0 : i32
    return %arg0, %c0_i32 : i32, i32
  }
  func.func @transform_1(%arg0: i32) -> (i32, i32) {
    %c0_i32 = arith.constant 0 : i32
    %c0_i32_0 = arith.constant 0 : i32
    %c0_i32_1 = arith.constant 0 : i32
    return %c0_i32, %c0_i32_0 : i32, i32
  }
  func.func @transform_2(%arg0: i32) -> (i32, i32) {
    %c0_i32 = arith.constant 0 : i32
    %c0_i32_0 = arith.constant 0 : i32
    %c0_i32_1 = arith.constant 0 : i32
    return %c0_i32, %c0_i32_0 : i32, i32
  }
  func.func @transform_3(%arg0: i32) -> (i32, i32) {
    %c0_i32 = arith.constant 0 : i32
    %c0_i32_0 = arith.constant 0 : i32
    %c0_i32_1 = arith.constant 0 : i32
    return %c0_i32, %c0_i32_0 : i32, i32
  }
  func.func @transform_4(%arg0: i32) -> (i32, i32) {
    %c0_i32 = arith.constant 0 : i32
    %c0_i32_0 = arith.constant 0 : i32
    %c0_i32_1 = arith.constant 0 : i32
    return %c0_i32, %c0_i32_0 : i32, i32
  }
  func.func @transform_5(%arg0: i32) -> (i32, i32) {
    %c0_i32 = arith.constant 0 : i32
    %c0_i32_0 = arith.constant 0 : i32
    return %arg0, %c0_i32 : i32, i32
  }
}

</mosaic_0001>

<bundles_post_ra>
// kernel: value_prediction_head.1
= control target key start
LH: loop header
LB: loop body
LE: loop exit
PB: predicated region body
PF: predicated region fallthrough
CT: control target
= control target key end

     0   :  { %v259_v1 = vmov 0.0   ;;  %vm260_vm0 = vmmov 0   ;;  %vm46_vm1 = vcmask 261120   ;;  %s322_s0 = inlined_call_operand.vmem [shape: bf16[8,32], index: 0, kind: input, shape index: {}]   ;;  %s323_s1 = inlined_call_operand.vmem [shape: bf16[32,64], index: 1, kind: input, shape index: {}]   ;;  %s324_s2 = inlined_call_operand.vmem [shape: f32[1,64], index: 2, kind: input, shape index: {}]   ;;  %s325_s3 = inlined_call_operand.vmem [shape: bf16[64,128], index: 3, kind: input, shape index: {}]   ;;  %s326_s4 = inlined_call_operand.vmem [shape: f32[1,128], index: 4, kind: input, shape index: {}]   ;;  %s327_s5 = inlined_call_operand.hbm [shape: f32[8,128], index: 5, kind: output, shape index: {}]  }
   0x1   :  { %v231_v0 = vld [vmem:[%s323_s1 + $0x8] sm:$0xff]   ;;  %208 = vmatprep.subr.bf16.mxu0 %v259_v1  ;;  %216 = vmatprep.subr.bf16.mxu1 %v259_v1  ;;  %v232_v2 = vld [vmem:[%s323_s1] sm:$0xff]   ;;  %v233_v3 = vld [vmem:[%s325_s3 + $0x18] sm:$0xff]  }
   0x2   :  { %209 = vmatpush3.bf16.msra.mxu0 %v231_v0  ;;  %212 = vmatprep.mubr.msk.bf16.mxu0 %vm260_vm0, %v259_v1  ;;  %v234_v4 = vld [vmem:[%s325_s3 + $0x10] sm:$0xff]   ;;  %v22_v5 = vld [vmem:[%s322_s0] sm:$0xf] }
   0x3   :  { %210 = vmatprep.subr.bf16.mxu0 %v259_v1  ;;  %224 = vmatprep.mubr.msk.bf16.mxu1 %vm260_vm0, %v259_v1 }
   0x4   :  { %217 = vmatpush3.bf16.msra.mxu1 %v233_v3 }
   0x5   :  { %218 = vmatprep.subr.bf16.mxu1 %v259_v1 }
   0x6   :  { %211 = vmatpush3.bf16.msra.mxu0 %v232_v2 }
   0x7   :  { %10 = vsyncpa [#allocation3], 0  ;;  %v235_v6 = vld [vmem:[%s325_s3 + $0x8] sm:$0xff]   ;;  %v236_v7 = vld [vmem:[%s325_s3] sm:$0xff]   ;;  %vm131_vm2 = vcmask 523264   ;;  %s261_s9 = smov [#allocation2]  }
   0x8   :  { %219 = vmatpush3.bf16.msra.mxu1 %v234_v4  ;;  %v190_v8 = vld [vmem:[%s324_s2] ss:$0 sm:$0xff]  ;;  %s182_s3 = sshll.u32 %s261_s9, 4  ;;  %s183_s3 = int_to_ptr.vmem [resolvable:$true] %s182_s3 }
   0x9   :  { %213 = vmatmul.mubr.msk.bf16.vlgmr.msra.gmra.mxu0 %vm46_vm1, %v22_v5  ;;  %220 = vmatprep.subr.bf16.mxu1 %v259_v1  ;;  %v194_v16 = vld [vmem:[%s326_s4] ss:$0 sm:$0xff]  ;;  %s237_s2 = scalar_lea.vmem %s183_s3, 128  ;;  %p242_p1 = scmp.lt.s32.totalorder %s183_s3, %s183_s3 }
   0xa   :  { %p238_p0 = scmp.ne.s32.totalorder %s183_s3, %s237_s2  ;;  %p243_p2 = scmp.lt.s32.totalorder %s237_s2, %s237_s2 }
   0xc   :  { %221 = vmatpush3.bf16.msra.mxu1 %v235_v6  ;;  %p244_p3 = por %p243_p2, %p242_p1 }
   0xd   :  { %222 = vmatprep.subr.bf16.mxu1 %v259_v1 }
   0xe   :  { %p245_p4 = pnand %p244_p3, %p238_p0 }
  0x10   :  { %223 = vmatpush3.bf16.msra.mxu1 %v236_v7 }
  0xc9   :  { %v84_v9 = vpop.f32.mrf.mxu0 }
  0xca   :  { %v85_v10 = vadd.f32 %v190_v8, %v84_v9 }
  0xcb   :  { %v214_v11 = vpop.f32.mrf.mxu0 }
  0xcc   :  { %v90_v12 = vmax.f32 %v85_v10, 0.0 }
  0xcd   :  { %v87_v13 = vpop.f32.mrf.mxu0 }
  0xce   :  { %v91_v14 = vpack.c.bf16 %v90_v12, %v90_v12 }
  0xcf   :  { %v215_v15 = vpop.f32.mrf.mxu0 }
  0xd0   :  { %225 = vmatmul.mubr.msk.bf16.vlgmr.msra.gmra.mxu1 %vm131_vm2, %v91_v14 }
 0x190   :  { %v169_v17 = vpop.f32.mrf.mxu1 }
 0x191   :  { %v170_v18 = vadd.f32 %v194_v16, %v169_v17 }
 0x192   :  { %v226_v19 = vpop.f32.mrf.mxu1 }
 0x193   :  { %175 = vst [vmem:[#allocation2] sm:$0xff] %v170_v18 }
 0x194   :  { %v172_v20 = vpop.f32.mrf.mxu1 }
 0x195   :  { %248 = shalt.err (!%p245_p4)
}
 0x196   :  { %185 = dma.vmem_to_hbm [thread:$0]  %s183_s3, 128, %s327_s5, [#allocation3]   ;;  %v227_v21 = vpop.f32.mrf.mxu1 }
 0x197   :  { %257 = dma.done.wait [#allocation3], 128  }
 0x198   :  { %258 = vsyncadd [#allocation3], 4294967168 }
 0x199   :  { %189 = vsyncpa [#allocation3], 1 }

</bundles_post_ra>
